<compile_context>
chip_gen: v7x
topology: tpu7x:2x2x1
jax: 0.10.0
libtpu: 0.0.40
codegen_flags: <defaults>
</compile_context>

<pallas_src>
import functools

import jax
import jax.numpy as jnp
from jax import lax
from jax.experimental import pallas as pl
from jax.experimental.pallas import tpu as pltpu


def _round_up(x, m):
    return ((x + m - 1) // m) * m


def _choose_batch_tile(B, max_tile=64):
    """Batch tile: multiple of 8 (sublane) and, when possible, >= 2 batch
    blocks so both v7x TensorCores get work on the 'parallel' axis."""
    if B < 8:
        return B  # single block == full dim -> always a legal block shape
    half = ((B // 2) // 8) * 8
    # TODO(synk): for B < 16 on v7x, time-axis core sharding (per-core partial
    # sums + cross-core add) would be needed to use both TensorCores.
    return max(8, min(max_tile, half)) if half else 8


def _choose_time_tile(T, tb, D, Hp, weight_bytes, target_bytes=40 * 2**20):
    """Time tile (multiple of 8).  Prefers an exact divisor of T; otherwise
    returns the largest in-budget multiple of 8 and the ragged tail block is
    masked inside the kernel.  The budget counts the double-buffered f32 data
    tile, its in-kernel bf16 copy and the f32 (tb*tt, Hp) encoder activation,
    minus the resident (single-buffered) weights."""
    row_bytes = tb * (2 * D * 4 + D * 2 + Hp * 4)   # per time step of a tile
    budget = max(2 * 2**20, target_bytes - weight_bytes)
    max_tt = max(8, min(T, budget // max(row_bytes, 1)))
    max_tt = (max_tt // 8) * 8
    if T % 8 == 0 and T <= max_tt:
        return T
    for tt in range(max_tt, 7, -8):                 # exact multiple-of-8 divisor
        if T % tt == 0:
            return tt
    return max_tt                                   # ragged tail (masked)


def _model_kernel(x_ref, w_enc_ref, b_enc_ref, w_cls_ref, b_cls_ref,
                  o_ref, acc_ref, *, total_t):
    t = pl.program_id(1)

    @pl.when(t == 0)
    def _():
        acc_ref[...] = jnp.zeros_like(acc_ref)

    tb, tt, d = x_ref.shape
    hp = acc_ref.shape[-1]

    # Encoder: one flattened (tb*tt, D) x (D, Hp) MXU matmul, bf16 inputs,
    # f32 accumulation.  The f32 -> bf16 cast happens here in VMEM so the HBM
    # read of `data` stays unpadded and uncopied.
    x = x_ref[...].astype(jnp.bfloat16).reshape(tb * tt, d)
    h = jnp.dot(x, w_enc_ref[...], preferred_element_type=jnp.float32)
    h = jnp.maximum(h + b_enc_ref[...], 0.0)          # bias + ReLU, f32
    h = h.reshape(tb, tt, hp)

    if total_t % tt != 0:
        # Ragged time tail: out-of-range steps hold unspecified data; zero
        # them so the running sum only sees the first `total_t` steps.
        t_ids = t * tt + lax.broadcasted_iota(jnp.int32, (1, tt, 1), 1)
        h = jnp.where(t_ids < total_t, h, 0.0)

    acc_ref[...] += jnp.sum(h, axis=1)                # running sum over time

    @pl.when(t == pl.num_programs(1) - 1)
    def _():
        pooled = acc_ref[...] * (1.0 / total_t)       # torch.mean(out, dim=1)
        out = jnp.dot(pooled.astype(jnp.bfloat16), w_cls_ref[...],
                      preferred_element_type=jnp.float32) + b_cls_ref[...]
        o_ref[...] = out.astype(o_ref.dtype)


def model_forward(data, lengths, w_enc, b_enc, w_cls, b_cls):
    del lengths  # see TODO(synk) at top of file

    B, T, D = data.shape
    H = w_enc.shape[-1]
    C = w_cls.shape[-1]
    Hp = _round_up(H, 128)
    Cp = _round_up(C, 128)

    # Small weights/biases: pad to lane multiples and cast in the wrapper
    # (cheap).  `data` is NOT padded/cast here on purpose.
    w_enc_p = jnp.zeros((D, Hp), jnp.bfloat16).at[:, :H].set(
        w_enc.astype(jnp.bfloat16))
    b_enc_p = jnp.zeros((1, Hp), jnp.float32).at[:, :H].set(
        b_enc.reshape(1, H).astype(jnp.float32))
    w_cls_p = jnp.zeros((Hp, Cp), jnp.bfloat16).at[:H, :C].set(
        w_cls.astype(jnp.bfloat16))
    b_cls_p = jnp.zeros((1, Cp), jnp.float32).at[:, :C].set(
        b_cls.reshape(1, C).astype(jnp.float32))

    total_t = T
    if T < 8:
        # Rare edge case: time axis smaller than one sublane tile; pad it so
        # the time tile stays 8-aligned (masked in-kernel, mean still / T).
        data = jnp.pad(data, ((0, 0), (0, 8 - T), (0, 0)))
        T = 8

    tb = _choose_batch_tile(B)
    grid_b = pl.cdiv(B, tb)
    Bp = grid_b * tb                 # only the tiny output is padded in B

    weight_bytes = D * Hp * 2 + Hp * 4 + Hp * Cp * 2 + Cp * 4
    tt = _choose_time_tile(T, tb, D, Hp, weight_bytes)
    grid_t = pl.cdiv(T, tt)

    # VMEM working set: double-buffered f32 data tile + its bf16 copy + f32
    # encoder activation + single-buffered weights + accumulator + output.
    data_tile = tb * tt * D * 4
    est = (2 * data_tile + data_tile // 2 + tb * tt * Hp * 4
           + weight_bytes + tb * Hp * 4 + 2 * tb * Cp * 4)
    # Limit = working set + headroom; never clamp below the working set.
    vmem_limit = int(max(min(est + 12 * 2**20, 56 * 2**20),
                         est + 4 * 2**20, 32 * 2**20))
    # TODO(synk): for huge H (weights not VMEM-resident on v7x) add an
    # H-tiling grid axis instead of assuming full weight residency.

    kernel = functools.partial(_model_kernel, total_t=total_t)
    out_shape = jax.ShapeDtypeStruct((Bp, Cp), jnp.float32)

    def call(single_buffer_weights):
        def const_spec(shape):
            idx = lambda b, t: (0,) * len(shape)
            if single_buffer_weights:
                # Grid-invariant operands never re-DMA; one buffer suffices.
                return pl.BlockSpec(shape, idx, pipeline_mode=pl.Buffered(1))
            return pl.BlockSpec(shape, idx)

        return pl.pallas_call(
            kernel,
            out_shape=out_shape,
            grid_spec=pltpu.PrefetchScalarGridSpec(
                num_scalar_prefetch=0,
                grid=(grid_b, grid_t),
                in_specs=[
                    pl.BlockSpec((tb, tt, D), lambda b, t: (b, t, 0)),  # data
                    const_spec((D, Hp)),     # encoder weight (bf16)
                    const_spec((1, Hp)),     # encoder bias   (f32)
                    const_spec((Hp, Cp)),    # classifier weight (bf16)
                    const_spec((1, Cp)),     # classifier bias   (f32)
                ],
                out_specs=pl.BlockSpec((tb, Cp), lambda b, t: (b, 0)),
                scratch_shapes=[pltpu.VMEM((tb, Hp), jnp.float32)],
            ),
            compiler_params=pltpu.CompilerParams(
                dimension_semantics=("parallel", "arbitrary"),
                vmem_limit_bytes=vmem_limit),
        )(data, w_enc_p, b_enc_p, w_cls_p, b_cls_p)

    try:
        out_p = call(single_buffer_weights=True)
    except Exception:
        # Fallback if this JAX build rejects pipeline_mode=Buffered(1):
        # identical kernel, default double-buffered weights.
        out_p = call(single_buffer_weights=False)

    return out_p[:B, :C]


def reference_forward(data, lengths, w_enc, b_enc, w_cls, b_cls):
    """Pure-JAX reference matching the kernel's bf16-input / f32-accum math."""
    del lengths
    h = jnp.einsum("btd,dh->bth",
                   data.astype(jnp.bfloat16), w_enc.astype(jnp.bfloat16),
                   preferred_element_type=jnp.float32)
    h = jnp.maximum(h + b_enc.reshape(1, 1, -1).astype(jnp.float32), 0.0)
    pooled = jnp.mean(h, axis=1)
    out = jnp.dot(pooled.astype(jnp.bfloat16), w_cls.astype(jnp.bfloat16),
                  preferred_element_type=jnp.float32)
    return out + b_cls.reshape(1, -1).astype(jnp.float32)


if __name__ == "__main__":
    B, T, D, H, C = 2, 8, 32, 32, 4

    key = jax.random.PRNGKey(0)
    k_x, k_we, k_be, k_wc, k_bc = jax.random.split(key, 5)

    data = jax.random.normal(k_x, (B, T, D), dtype=jnp.float32)
    lengths = jnp.full((B,), T, dtype=jnp.int32)

    w_enc = jax.random.normal(k_we, (D, H), dtype=jnp.float32) * 0.1
    b_enc = jax.random.normal(k_be, (1, H), dtype=jnp.float32) * 0.1
    w_cls = jax.random.normal(k_wc, (H, C), dtype=jnp.float32) * 0.1
    b_cls = jax.random.normal(k_bc, (1, C), dtype=jnp.float32) * 0.1

    out = model_forward(data, lengths, w_enc, b_enc, w_cls, b_cls)
    out = jax.block_until_ready(out)

    ref = reference_forward(data, lengths, w_enc, b_enc, w_cls, b_cls)
    assert out.shape == (B, C)
    assert jnp.allclose(out, ref, atol=2e-3, rtol=2e-3)

    print("KERNEL_OK")
</pallas_src>

<mosaic_0001>
module attributes {stable_mosaic.version = 11 : i64} {
  func.func @_model_kernel(%arg0: i32, %arg1: i32, %arg2: memref<2x8x32xf32, #tpu.memory_space<vmem>>, %arg3: memref<32x128xbf16, #tpu.memory_space<vmem>>, %arg4: memref<1x128xf32, #tpu.memory_space<vmem>>, %arg5: memref<128x128xbf16, #tpu.memory_space<vmem>>, %arg6: memref<1x128xf32, #tpu.memory_space<vmem>>, %arg7: memref<2x128xf32, #tpu.memory_space<vmem>>, %arg8: memref<2x128xf32, #tpu.memory_space<vmem>>) attributes {dimension_semantics = [#tpu.dimension_semantics<parallel>, #tpu.dimension_semantics<arbitrary>], iteration_bounds = array<i64: 1, 1>, scalar_prefetch = 0 : i64, scratch_operands = 1 : i64, tpu.core_type = #tpu.core_type<tc>, window_params = [{transform_indices = @transform_0, window_bounds = array<i64: 2, 8, 32>}, {pipeline_mode = #tpu.pipeline_mode<synchronous>, transform_indices = @transform_1, window_bounds = array<i64: 32, 128>}, {pipeline_mode = #tpu.pipeline_mode<synchronous>, transform_indices = @transform_2, window_bounds = array<i64: 1, 128>}, {pipeline_mode = #tpu.pipeline_mode<synchronous>, transform_indices = @transform_3, window_bounds = array<i64: 128, 128>}, {pipeline_mode = #tpu.pipeline_mode<synchronous>, transform_indices = @transform_4, window_bounds = array<i64: 1, 128>}, {transform_indices = @transform_5, window_bounds = array<i64: 2, 128>}]} {
    %c0_i32 = arith.constant 0 : i32
    %0 = arith.cmpi eq, %arg1, %c0_i32 : i32
    %1 = arith.extui %0 : i1 to i32
    %c0_i32_0 = arith.constant 0 : i32
    %2 = arith.cmpi ne, %1, %c0_i32_0 : i32
    scf.if %2 {
      %cst_15 = arith.constant 0.000000e+00 : f32
      %21 = vector.broadcast %cst_15 : f32 to vector<2x128xf32>
      %c0_16 = arith.constant 0 : index
      %c0_17 = arith.constant 0 : index
      %22 = vector.load %arg8[%c0_16, %c0_17] : memref<2x128xf32, #tpu.memory_space<vmem>>, vector<2x128xf32>
      tpu.vector_store %arg8[%c0_16, %c0_17], %21 {strides = array<i32>} : memref<2x128xf32, #tpu.memory_space<vmem>>, vector<2x128xf32>,
    } else {
    }
    %c0 = arith.constant 0 : index
    %c0_1 = arith.constant 0 : index
    %c0_2 = arith.constant 0 : index
    %3 = vector.load %arg2[%c0, %c0_1, %c0_2] : memref<2x8x32xf32, #tpu.memory_space<vmem>>, vector<2x8x32xf32>
    %4 = arith.truncf %3 : vector<2x8x32xf32> to vector<2x8x32xbf16>
    %5 = vector.shape_cast %4 : vector<2x8x32xbf16> to vector<16x32xbf16>
    %c0_3 = arith.constant 0 : index
    %c0_4 = arith.constant 0 : index
    %6 = vector.load %arg3[%c0_3, %c0_4] : memref<32x128xbf16, #tpu.memory_space<vmem>>, vector<32x128xbf16>
    %cst = arith.constant dense<0.000000e+00> : vector<16x128xf32>
    %7 = tpu.matmul %5, %6, %cst {dimension_numbers = #tpu.dot_dimension_numbers<[1], [0], [0], [1], [0, 0, 1, 1], [], []>} : vector<16x32xbf16>, vector<32x128xbf16>, vector<16x128xf32> -> vector<16x128xf32>
    %c0_5 = arith.constant 0 : index
    %c0_6 = arith.constant 0 : index
    %8 = vector.load %arg4[%c0_5, %c0_6] : memref<1x128xf32, #tpu.memory_space<vmem>>, vector<1x128xf32>
    %9 = vector.broadcast %8 : vector<1x128xf32> to vector<16x128xf32>
    %10 = arith.addf %7, %9 : vector<16x128xf32>
    %cst_7 = arith.constant 0.000000e+00 : f32
    %11 = vector.broadcast %cst_7 : f32 to vector<16x128xf32>
    %12 = arith.maximumf %10, %11 : vector<16x128xf32>
    %13 = vector.shape_cast %12 : vector<16x128xf32> to vector<2x8x128xf32>
    %c0_8 = arith.constant 0 : index
    %c0_9 = arith.constant 0 : index
    %14 = vector.load %arg8[%c0_8, %c0_9] : memref<2x128xf32, #tpu.memory_space<vmem>>, vector<2x128xf32>
    %cst_10 = arith.constant dense<0.000000e+00> : vector<2x128xf32>
    %15 = vector.multi_reduction <add>, %13, %cst_10 [1] : vector<2x8x128xf32> to vector<2x128xf32>
    %16 = arith.addf %14, %15 : vector<2x128xf32>
    %c0_11 = arith.constant 0 : index
    %c0_12 = arith.constant 0 : index
    %17 = vector.load %arg8[%c0_11, %c0_12] : memref<2x128xf32, #tpu.memory_space<vmem>>, vector<2x128xf32>
    tpu.vector_store %arg8[%c0_11, %c0_12], %16 {strides = array<i32>} : memref<2x128xf32, #tpu.memory_space<vmem>>, vector<2x128xf32>,
    %c0_i32_13 = arith.constant 0 : i32
    %18 = arith.cmpi eq, %arg1, %c0_i32_13 : i32
    %19 = arith.extui %18 : i1 to i32
    %c0_i32_14 = arith.constant 0 : i32
    %20 = arith.cmpi ne, %19, %c0_i32_14 : i32
    scf.if %20 {
      %c0_15 = arith.constant 0 : index
      %c0_16 = arith.constant 0 : index
      %21 = vector.load %arg8[%c0_15, %c0_16] : memref<2x128xf32, #tpu.memory_space<vmem>>, vector<2x128xf32>
      %cst_17 = arith.constant 1.250000e-01 : f32
      %22 = vector.broadcast %cst_17 : f32 to vector<2x128xf32>
      %23 = arith.mulf %21, %22 : vector<2x128xf32>
      %24 = arith.truncf %23 : vector<2x128xf32> to vector<2x128xbf16>
      %c0_18 = arith.constant 0 : index
      %c0_19 = arith.constant 0 : index
      %25 = vector.load %arg5[%c0_18, %c0_19] : memref<128x128xbf16, #tpu.memory_space<vmem>>, vector<128x128xbf16>
      %cst_20 = arith.constant dense<0.000000e+00> : vector<2x128xf32>
      %26 = tpu.matmul %24, %25, %cst_20 {dimension_numbers = #tpu.dot_dimension_numbers<[1], [0], [0], [1], [0, 0, 1, 1], [], []>} : vector<2x128xbf16>, vector<128x128xbf16>, vector<2x128xf32> -> vector<2x128xf32>
      %c0_21 = arith.constant 0 : index
      %c0_22 = arith.constant 0 : index
      %27 = vector.load %arg6[%c0_21, %c0_22] : memref<1x128xf32, #tpu.memory_space<vmem>>, vector<1x128xf32>
      %28 = vector.broadcast %27 : vector<1x128xf32> to vector<2x128xf32>
      %29 = arith.addf %26, %28 : vector<2x128xf32>
      %c0_23 = arith.constant 0 : index
      %c0_24 = arith.constant 0 : index
      %30 = vector.load %arg7[%c0_23, %c0_24] : memref<2x128xf32, #tpu.memory_space<vmem>>, vector<2x128xf32>
      tpu.vector_store %arg7[%c0_23, %c0_24], %29 {strides = array<i32>} : memref<2x128xf32, #tpu.memory_space<vmem>>, vector<2x128xf32>,
    } else {
    }
    return
  }
  func.func @transform_0(%arg0: i32, %arg1: i32) -> (i32, i32, i32) {
    %c0_i32 = arith.constant 0 : i32
    %c0_i32_0 = arith.constant 0 : i32
    return %arg0, %arg1, %c0_i32 : i32, i32, i32
  }
  func.func @transform_1(%arg0: i32, %arg1: i32) -> (i32, i32) {
    %c0_i32 = arith.constant 0 : i32
    %c0_i32_0 = arith.constant 0 : i32
    %c0_i32_1 = arith.constant 0 : i32
    return %c0_i32, %c0_i32_0 : i32, i32
  }
  func.func @transform_2(%arg0: i32, %arg1: i32) -> (i32, i32) {
    %c0_i32 = arith.constant 0 : i32
    %c0_i32_0 = arith.constant 0 : i32
    %c0_i32_1 = arith.constant 0 : i32
    return %c0_i32, %c0_i32_0 : i32, i32
  }
  func.func @transform_3(%arg0: i32, %arg1: i32) -> (i32, i32) {
    %c0_i32 = arith.constant 0 : i32
    %c0_i32_0 = arith.constant 0 : i32
    %c0_i32_1 = arith.constant 0 : i32
    return %c0_i32, %c0_i32_0 : i32, i32
  }
  func.func @transform_4(%arg0: i32, %arg1: i32) -> (i32, i32) {
    %c0_i32 = arith.constant 0 : i32
    %c0_i32_0 = arith.constant 0 : i32
    %c0_i32_1 = arith.constant 0 : i32
    return %c0_i32, %c0_i32_0 : i32, i32
  }
  func.func @transform_5(%arg0: i32, %arg1: i32) -> (i32, i32) {
    %c0_i32 = arith.constant 0 : i32
    %c0_i32_0 = arith.constant 0 : i32
    return %arg0, %c0_i32 : i32, i32
  }
}

module attributes {stable_mosaic.version = 11 : i64} {
  func.func @_model_kernel(%arg0: i32, %arg1: i32, %arg2: memref<2x8x32xf32, #tpu.memory_space<vmem>>, %arg3: memref<32x128xbf16, #tpu.memory_space<vmem>>, %arg4: memref<1x128xf32, #tpu.memory_space<vmem>>, %arg5: memref<128x128xbf16, #tpu.memory_space<vmem>>, %arg6: memref<1x128xf32, #tpu.memory_space<vmem>>, %arg7: memref<2x128xf32, #tpu.memory_space<vmem>>, %arg8: memref<2x128xf32, #tpu.memory_space<vmem>>) attributes {dimension_semantics = [#tpu.dimension_semantics<parallel>, #tpu.dimension_semantics<arbitrary>], iteration_bounds = array<i64: 1, 1>, scalar_prefetch = 0 : i64, scratch_operands = 1 : i64, tpu.core_type = #tpu.core_type<tc>, window_params = [{transform_indices = @transform_0, window_bounds = array<i64: 2, 8, 32>}, {pipeline_mode = #tpu.pipeline_mode<synchronous>, transform_indices = @transform_1, window_bounds = array<i64: 32, 128>}, {pipeline_mode = #tpu.pipeline_mode<synchronous>, transform_indices = @transform_2, window_bounds = array<i64: 1, 128>}, {pipeline_mode = #tpu.pipeline_mode<synchronous>, transform_indices = @transform_3, window_bounds = array<i64: 128, 128>}, {pipeline_mode = #tpu.pipeline_mode<synchronous>, transform_indices = @transform_4, window_bounds = array<i64: 1, 128>}, {transform_indices = @transform_5, window_bounds = array<i64: 2, 128>}]} {
    %c0_i32 = arith.constant 0 : i32
    %0 = arith.cmpi eq, %arg1, %c0_i32 : i32
    %1 = arith.extui %0 : i1 to i32
    %c0_i32_0 = arith.constant 0 : i32
    %2 = arith.cmpi ne, %1, %c0_i32_0 : i32
    scf.if %2 {
      %cst_15 = arith.constant 0.000000e+00 : f32
      %21 = vector.broadcast %cst_15 : f32 to vector<2x128xf32>
      %c0_16 = arith.constant 0 : index
      %c0_17 = arith.constant 0 : index
      %22 = vector.load %arg8[%c0_16, %c0_17] : memref<2x128xf32, #tpu.memory_space<vmem>>, vector<2x128xf32>
      tpu.vector_store %arg8[%c0_16, %c0_17], %21 {strides = array<i32>} : memref<2x128xf32, #tpu.memory_space<vmem>>, vector<2x128xf32>,
    } else {
    }
    %c0 = arith.constant 0 : index
    %c0_1 = arith.constant 0 : index
    %c0_2 = arith.constant 0 : index
    %3 = vector.load %arg2[%c0, %c0_1, %c0_2] : memref<2x8x32xf32, #tpu.memory_space<vmem>>, vector<2x8x32xf32>
    %4 = arith.truncf %3 : vector<2x8x32xf32> to vector<2x8x32xbf16>
    %5 = vector.shape_cast %4 : vector<2x8x32xbf16> to vector<16x32xbf16>
    %c0_3 = arith.constant 0 : index
    %c0_4 = arith.constant 0 : index
    %6 = vector.load %arg3[%c0_3, %c0_4] : memref<32x128xbf16, #tpu.memory_space<vmem>>, vector<32x128xbf16>
    %cst = arith.constant dense<0.000000e+00> : vector<16x128xf32>
    %7 = tpu.matmul %5, %6, %cst {dimension_numbers = #tpu.dot_dimension_numbers<[1], [0], [0], [1], [0, 0, 1, 1], [], []>} : vector<16x32xbf16>, vector<32x128xbf16>, vector<16x128xf32> -> vector<16x128xf32>
    %c0_5 = arith.constant 0 : index
    %c0_6 = arith.constant 0 : index
    %8 = vector.load %arg4[%c0_5, %c0_6] : memref<1x128xf32, #tpu.memory_space<vmem>>, vector<1x128xf32>
    %9 = vector.broadcast %8 : vector<1x128xf32> to vector<16x128xf32>
    %10 = arith.addf %7, %9 : vector<16x128xf32>
    %cst_7 = arith.constant 0.000000e+00 : f32
    %11 = vector.broadcast %cst_7 : f32 to vector<16x128xf32>
    %12 = arith.maximumf %10, %11 : vector<16x128xf32>
    %13 = vector.shape_cast %12 : vector<16x128xf32> to vector<2x8x128xf32>
    %c0_8 = arith.constant 0 : index
    %c0_9 = arith.constant 0 : index
    %14 = vector.load %arg8[%c0_8, %c0_9] : memref<2x128xf32, #tpu.memory_space<vmem>>, vector<2x128xf32>
    %cst_10 = arith.constant dense<0.000000e+00> : vector<2x128xf32>
    %15 = vector.multi_reduction <add>, %13, %cst_10 [1] : vector<2x8x128xf32> to vector<2x128xf32>
    %16 = arith.addf %14, %15 : vector<2x128xf32>
    %c0_11 = arith.constant 0 : index
    %c0_12 = arith.constant 0 : index
    %17 = vector.load %arg8[%c0_11, %c0_12] : memref<2x128xf32, #tpu.memory_space<vmem>>, vector<2x128xf32>
    tpu.vector_store %arg8[%c0_11, %c0_12], %16 {strides = array<i32>} : memref<2x128xf32, #tpu.memory_space<vmem>>, vector<2x128xf32>,
    %c0_i32_13 = arith.constant 0 : i32
    %18 = arith.cmpi eq, %arg1, %c0_i32_13 : i32
    %19 = arith.extui %18 : i1 to i32
    %c0_i32_14 = arith.constant 0 : i32
    %20 = arith.cmpi ne, %19, %c0_i32_14 : i32
    scf.if %20 {
      %c0_15 = arith.constant 0 : index
      %c0_16 = arith.constant 0 : index
      %21 = vector.load %arg8[%c0_15, %c0_16] : memref<2x128xf32, #tpu.memory_space<vmem>>, vector<2x128xf32>
      %cst_17 = arith.constant 1.250000e-01 : f32
      %22 = vector.broadcast %cst_17 : f32 to vector<2x128xf32>
      %23 = arith.mulf %21, %22 : vector<2x128xf32>
      %24 = arith.truncf %23 : vector<2x128xf32> to vector<2x128xbf16>
      %c0_18 = arith.constant 0 : index
      %c0_19 = arith.constant 0 : index
      %25 = vector.load %arg5[%c0_18, %c0_19] : memref<128x128xbf16, #tpu.memory_space<vmem>>, vector<128x128xbf16>
      %cst_20 = arith.constant dense<0.000000e+00> : vector<2x128xf32>
      %26 = tpu.matmul %24, %25, %cst_20 {dimension_numbers = #tpu.dot_dimension_numbers<[1], [0], [0], [1], [0, 0, 1, 1], [], []>} : vector<2x128xbf16>, vector<128x128xbf16>, vector<2x128xf32> -> vector<2x128xf32>
      %c0_21 = arith.constant 0 : index
      %c0_22 = arith.constant 0 : index
      %27 = vector.load %arg6[%c0_21, %c0_22] : memref<1x128xf32, #tpu.memory_space<vmem>>, vector<1x128xf32>
      %28 = vector.broadcast %27 : vector<1x128xf32> to vector<2x128xf32>
      %29 = arith.addf %26, %28 : vector<2x128xf32>
      %c0_23 = arith.constant 0 : index
      %c0_24 = arith.constant 0 : index
      %30 = vector.load %arg7[%c0_23, %c0_24] : memref<2x128xf32, #tpu.memory_space<vmem>>, vector<2x128xf32>
      tpu.vector_store %arg7[%c0_23, %c0_24], %29 {strides = array<i32>} : memref<2x128xf32, #tpu.memory_space<vmem>>, vector<2x128xf32>,
    } else {
    }
    return
  }
  func.func @transform_0(%arg0: i32, %arg1: i32) -> (i32, i32, i32) {
    %c0_i32 = arith.constant 0 : i32
    %c0_i32_0 = arith.constant 0 : i32
    return %arg0, %arg1, %c0_i32 : i32, i32, i32
  }
  func.func @transform_1(%arg0: i32, %arg1: i32) -> (i32, i32) {
    %c0_i32 = arith.constant 0 : i32
    %c0_i32_0 = arith.constant 0 : i32
    %c0_i32_1 = arith.constant 0 : i32
    return %c0_i32, %c0_i32_0 : i32, i32
  }
  func.func @transform_2(%arg0: i32, %arg1: i32) -> (i32, i32) {
    %c0_i32 = arith.constant 0 : i32
    %c0_i32_0 = arith.constant 0 : i32
    %c0_i32_1 = arith.constant 0 : i32
    return %c0_i32, %c0_i32_0 : i32, i32
  }
  func.func @transform_3(%arg0: i32, %arg1: i32) -> (i32, i32) {
    %c0_i32 = arith.constant 0 : i32
    %c0_i32_0 = arith.constant 0 : i32
    %c0_i32_1 = arith.constant 0 : i32
    return %c0_i32, %c0_i32_0 : i32, i32
  }
  func.func @transform_4(%arg0: i32, %arg1: i32) -> (i32, i32) {
    %c0_i32 = arith.constant 0 : i32
    %c0_i32_0 = arith.constant 0 : i32
    %c0_i32_1 = arith.constant 0 : i32
    return %c0_i32, %c0_i32_0 : i32, i32
  }
  func.func @transform_5(%arg0: i32, %arg1: i32) -> (i32, i32) {
    %c0_i32 = arith.constant 0 : i32
    %c0_i32_0 = arith.constant 0 : i32
    return %arg0, %c0_i32 : i32, i32
  }
}

</mosaic_0001>

<bundles_post_ra>
// kernel: tpu_custom_call.1
= control target key start
LH: loop header
LB: loop body
LE: loop exit
PB: predicated region body
PF: predicated region fallthrough
CT: control target
= control target key end

     0   :  { %10 = vsyncpa [#allocation4], 0  ;;  %s570_s0 = inlined_call_operand.hbm [shape: f32[2,8,32], index: 0, kind: input, shape index: {}]   ;;  %s571_s1 = inlined_call_operand.hbm [shape: bf16[32,128], index: 1, kind: input, shape index: {}]   ;;  %s572_s2 = inlined_call_operand.vmem [shape: f32[1,128], index: 2, kind: input, shape index: {}]   ;;  %s573_s3 = inlined_call_operand.hbm [shape: bf16[128,128], index: 3, kind: input, shape index: {}]   ;;  %s574_s4 = inlined_call_operand.vmem [shape: f32[1,128], index: 4, kind: input, shape index: {}]   ;;  %s575_s5 = inlined_call_operand.hbm [shape: f32[2,128], index: 5, kind: output, shape index: {}]  }
   0x1   :  { %11 = vsyncpa [#allocation7], 0 }
   0x2   :  { %12 = vsyncpa [#allocation5], 0  ;;  %s470_s18 = smov [#allocation6]   ;;  %s376_s22 = scalar_lea.hbm %s571_s1, 256 }
   0x3   :  { %s30_s19 = sshll.u32 %s470_s18, 4  ;;  %p377_p0 = scmp.ne.s32.totalorder %s571_s1, %s376_s22  ;;  %s31_s19 = int_to_ptr.vmem [resolvable:$true] %s30_s19 }
   0x4   :  { %p380_p1 = scmp.lt.u32.totalorder %s376_s22, %s571_s1 }
   0x6   :  { %p382_p2 = pnand %p380_p1, %p377_p0 }
   0x8   :  { %385 = shalt.err (!%p382_p2)
}
   0x9   :  { %s386_s27 = scalar_lea.vmem %s31_s19, 256  ;;  %p391_p4 = scmp.lt.s32.totalorder %s31_s19, %s31_s19 }
   0xa   :  { %p387_p3 = scmp.ne.s32.totalorder %s31_s19, %s386_s27  ;;  %p392_p5 = scmp.lt.s32.totalorder %s386_s27, %s386_s27 }
   0xc   :  { %p393_p6 = por %p392_p5, %p391_p4 }
   0xe   :  { %p394_p7 = pnand %p393_p6, %p387_p3 }
  0x10   :  { %397 = shalt.err (!%p394_p7)
}
  0x11   :  { %s471_s28 = smov 64   ;;  %s472_s29 = smov 4  }
  0x12   :  { %36 = dma.hbm_to_vmem [thread:$0]  %s571_s1, 256, %s31_s19, [#allocation7], %s471_s28, %s471_s28, %s472_s29  }
  0x13   :  { %s473_s7 = smov [#allocation3]   ;;  %s398_s11 = scalar_lea.hbm %s570_s0, 256 }
  0x14   :  { %s18_s8 = sshll.u32 %s473_s7, 4  ;;  %p399_p8 = scmp.ne.s32.totalorder %s570_s0, %s398_s11  ;;  %s19_s8 = int_to_ptr.vmem [resolvable:$true] %s18_s8 }
  0x15   :  { %p402_p9 = scmp.lt.u32.totalorder %s398_s11, %s570_s0 }
  0x17   :  { %p404_p10 = pnand %p402_p9, %p399_p8 }
  0x19   :  { %407 = shalt.err (!%p404_p10)
}
  0x1a   :  { %s408_s16 = scalar_lea.vmem %s19_s8, 256  ;;  %p413_p12 = scmp.lt.s32.totalorder %s19_s8, %s19_s8 }
  0x1b   :  { %p409_p11 = scmp.ne.s32.totalorder %s19_s8, %s408_s16  ;;  %p414_p13 = scmp.lt.s32.totalorder %s408_s16, %s408_s16 }
  0x1d   :  { %p415_p0 = por %p414_p13, %p413_p12 }
  0x1f   :  { %p416_p1 = pnand %p415_p0, %p409_p11 }
  0x21   :  { %419 = shalt.err (!%p416_p1)
}
  0x22   :  { %s474_s1 = smov 128   ;;  %s475_s17 = smov 8  }
  0x23   :  { %24 = dma.hbm_to_vmem [thread:$0]  %s570_s0, 256, %s19_s8, [#allocation4], %s474_s1, %s474_s1, %s475_s17  }
  0x24   :  { %s476_s20 = smov [#allocation8]   ;;  %s420_s24 = scalar_lea.hbm %s573_s3, 1024 }
  0x25   :  { %s44_s21 = sshll.u32 %s476_s20, 4  ;;  %p421_p2 = scmp.ne.s32.totalorder %s573_s3, %s420_s24  ;;  %s45_s21 = int_to_ptr.vmem [resolvable:$true] %s44_s21 }
  0x26   :  { %p424_p3 = scmp.lt.u32.totalorder %s420_s24, %s573_s3 }
  0x28   :  { %p426_p4 = pnand %p424_p3, %p421_p2 }
  0x2a   :  { %429 = shalt.err (!%p426_p4)
}
  0x2b   :  { %s430_s6 = scalar_lea.vmem %s45_s21, 1024  ;;  %p435_p6 = scmp.lt.s32.totalorder %s45_s21, %s45_s21 }
  0x2c   :  { %p431_p5 = scmp.ne.s32.totalorder %s45_s21, %s430_s6  ;;  %p436_p7 = scmp.lt.s32.totalorder %s430_s6, %s430_s6 }
  0x2e   :  { %p437_p8 = por %p436_p7, %p435_p6 }
  0x30   :  { %p438_p9 = pnand %p437_p8, %p431_p5 }
  0x32   :  { %441 = shalt.err (!%p438_p9)
}
  0x33   :  { %50 = dma.hbm_to_vmem [thread:$0]  %s573_s3, 1024, %s45_s21, [#allocation7], %s471_s28, %s471_s28, %s472_s29  }
  0x34   :  { %464 = dma.done.wait [#allocation4], 256  }
  0x35   :  { %465 = vsyncadd [#allocation4], 4294967040 }
  0x36   :  { %466 = dma.done.wait [#allocation7], 1280  }
  0x37   :  { %467 = vsyncadd [#allocation7], 4294966016  ;;  %v477_v0 = vmov 0.0   ;;  %vm478_vm0 = vmmov 0   ;;  %v366_v1 = vld [vmem:[#allocation6] sm:$0xff]   ;;  %v367_v2 = vld [vmem:[#allocation6 + $0x8] sm:$0xff]  }
  0x38   :  { %328 = vmatprep.subr.bf16.mxu0 %v477_v0  ;;  %67 = vst [vmem:[#allocation2] sm:$0x3] %v477_v0  ;;  %332 = vmatprep.mubr.msk.bf16.mxu0 %vm478_vm0, %v477_v0  ;;  %v68_v3 = vld [vmem:[#allocation3] sm:$0xff]  ;;  %v69_v4 = vld [vmem:[#allocation3 + $0x8] sm:$0xff]  ;;  %vm100_vm1 = vcmask 261120   ;;  %v370_v8 = vld [vmem:[#allocation8 + $0x10] sm:$0xff]  }
  0x39   :  { %336 = vmatprep.subr.bf16.mxu1 %v477_v0  ;;  %352 = vmatprep.mubr.msk.bf16.mxu1 %vm478_vm0, %v477_v0  ;;  %v315_v5 = vpack.c.bf16 %v69_v4, %v68_v3  ;;  %v368_v6 = vld [vmem:[#allocation8] sm:$0xff]   ;;  %v369_v7 = vld [vmem:[#allocation8 + $0x8] sm:$0xff]   ;;  %v371_v9 = vld [vmem:[#allocation8 + $0x18] sm:$0xff]   ;;  %vm162_vm2 = vcmask 1041409   ;;  %s479_s8 = smov [#allocation9]  }
  0x3a   :  { %329 = vmatpush3.bf16.msra.mxu0 %v366_v1  ;;  %337 = vmatpush3.bf16.msra.mxu1 %v368_v6  ;;  %v372_v10 = vld [vmem:[#allocation8 + $0x20] sm:$0xff]   ;;  %v373_v11 = vld [vmem:[#allocation8 + $0x28] sm:$0xff]   ;;  %v374_v12 = vld [vmem:[#allocation8 + $0x30] sm:$0xff]   ;;  %s291_s9 = sshll.u32 %s479_s8, 4  ;;  %s292_s9 = int_to_ptr.vmem [resolvable:$true] %s291_s9 }
  0x3b   :  { %330 = vmatprep.subr.bf16.mxu0 %v477_v0  ;;  %338 = vmatprep.subr.bf16.mxu1 %v477_v0  ;;  %v375_v13 = vld [vmem:[#allocation8 + $0x38] sm:$0xff]   ;;  %s442_s10 = scalar_lea.vmem %s292_s9, 32  ;;  %p447_p11 = scmp.lt.s32.totalorder %s292_s9, %s292_s9 }
  0x3c   :  { %v301_v14 = vld [vmem:[%s572_s2] ss:$0 sm:$0xff]  ;;  %p443_p10 = scmp.ne.s32.totalorder %s292_s9, %s442_s10  ;;  %p448_p12 = scmp.lt.s32.totalorder %s442_s10, %s442_s10 }
  0x3d   :  { %v306_v41 = vld [vmem:[%s574_s4] ss:$0 sm:$0xff] }
  0x3e   :  { %331 = vmatpush3.bf16.msra.mxu0 %v367_v2  ;;  %339 = vmatpush3.bf16.msra.mxu1 %v369_v7  ;;  %p449_p13 = por %p448_p12, %p447_p11 }
  0x3f   :  { %340 = vmatprep.subr.bf16.mxu1 %v477_v0  ;;  %v147_v34 = vld [vmem:[#allocation2] sm:$0x3] }
  0x40   :  { %p450_p0 = pnand %p449_p13, %p443_p10 }
  0x41   :  { %333 = vmatmul.mubr.msk.bf16.vlgmr.msra.gmra.mrb[0].mxu0 %vm100_vm1, %v315_v5 }
  0x42   :  { %341 = vmatpush3.bf16.msra.mxu1 %v370_v8 }
  0x43   :  { %342 = vmatprep.subr.bf16.mxu1 %v477_v0 }
  0x46   :  { %343 = vmatpush3.bf16.msra.mxu1 %v371_v9 }
  0x47   :  { %344 = vmatprep.subr.bf16.mxu1 %v477_v0 }
  0x4a   :  { %345 = vmatpush3.bf16.msra.mxu1 %v372_v10 }
  0x4b   :  { %346 = vmatprep.subr.bf16.mxu1 %v477_v0 }
  0x4e   :  { %347 = vmatpush3.bf16.msra.mxu1 %v373_v11 }
  0x4f   :  { %348 = vmatprep.subr.bf16.mxu1 %v477_v0 }
  0x52   :  { %349 = vmatpush3.bf16.msra.mxu1 %v374_v12 }
  0x53   :  { %350 = vmatprep.subr.bf16.mxu1 %v477_v0 }
  0x56   :  { %351 = vmatpush3.bf16.msra.mxu1 %v375_v13 }
 0x114   :  { %v138_v15 = vpop.f32.mrb[0].mxu0 }
 0x115   :  { %v139_v16 = vadd.f32 %v301_v14, %v138_v15  ;;  %v334_v17 = vpop.f32.mrb[1].mxu0 }
 0x116   :  { %v141_v18 = vpop.f32.mrb[2].mxu0 }
 0x117   :  { %v145_v19 = vmax.f32 %v139_v16, 0.0  ;;  %v142_v20 = vadd.f32 %v301_v14, %v141_v18  ;;  %v335_v21 = vpop.f32.mrb[3].mxu0 }
 0x119   :  { %v148_v22 = vrot.slane %v145_v19, 4  ;;  %v146_v23 = vmax.f32 %v142_v20, 0.0 }
 0x11b   :  { %v149_v24 = vadd.f32 %v148_v22, %v145_v19  ;;  %v154_v25 = vrot.slane %v146_v23, 4 }
 0x11d   :  { %v150_v26 = vrot.slane %v149_v24, 2  ;;  %v155_v27 = vadd.f32 %v154_v25, %v146_v23 }
 0x11f   :  { %v151_v28 = vadd.f32 %v150_v26, %v149_v24  ;;  %v156_v29 = vrot.slane %v155_v27, 2 }
 0x121   :  { %v152_v30 = vrot.slane %v151_v28, 1  ;;  %v157_v31 = vadd.f32 %v156_v29, %v155_v27 }
 0x123   :  { %v158_v32 = vrot.slane %v157_v31, 1  ;;  %v153_v33 = vadd.f32 %v152_v30, %v151_v28 }
 0x125   :  { %v159_v35 = vadd.f32 %v158_v32, %v157_v31 }
 0x127   :  { %v163_v36 = vsel %vm162_vm2, %v159_v35, %v153_v33 }
 0x128   :  { %v165_v37 = vadd.f32 %v163_v36, %v147_v34 }
 0x12a   :  { %166 = vst [vmem:[#allocation2] sm:$0x3] %v165_v37 }
 0x131   :  { %v170_v38 = vld [vmem:[#allocation2] sm:$0x3] }
 0x132   :  { %v171_v39 = vmul.f32 0.125, %v170_v38 }
 0x134   :  { %v172_v40 = vpack.c.bf16 %v171_v39, %v171_v39 }
 0x136   :  { %353 = vmatmul.mubr.bf16.vlgmr.msra.gmra.mrb[0].mxu1 %v172_v40 }
 0x209   :  { %v278_v42 = vpop.f32.mrb[0].mxu1 }
 0x20a   :  { %v279_v43 = vadd.f32 %v306_v41, %v278_v42  ;;  %v354_v44 = vpop.f32.mrb[1].mxu1 }
 0x20b   :  { %v281_v45 = vpop.f32.mrb[2].mxu1 }
 0x20c   :  { %284 = vst [vmem:[#allocation9] sm:$0x3] %v279_v43  ;;  %v355_v46 = vpop.f32.mrb[3].mxu1 }
 0x20d   :  { %453 = shalt.err (!%p450_p0)
}
 0x20e   :  { %s454_s4 = scalar_lea.hbm %s575_s5, 32 }
 0x20f   :  { %p455_p1 = scmp.ne.s32.totalorder %s575_s5, %s454_s4  ;;  %p458_p2 = scmp.lt.u32.totalorder %s454_s4, %s575_s5 }
 0x211   :  { %p460_p3 = pnand %p458_p2, %p455_p1 }
 0x213   :  { %463 = shalt.err (!%p460_p3)
}
 0x214   :  { %294 = dma.vmem_to_hbm [thread:$0]  %s292_s9, 32, %s575_s5, [#allocation5]  }
 0x215   :  { %468 = dma.done.wait [#allocation5], 32  }
 0x216   :  { %469 = vsyncadd [#allocation5], 4294967264 }
 0x217   :  { %298 = vsyncpa [#allocation4], 1 }
 0x218   :  { %299 = vsyncpa [#allocation7], 1 }
 0x219   :  { %300 = vsyncpa [#allocation5], 1 }

// kernel: tpu_custom_call.1
= control target key start
LH: loop header
LB: loop body
LE: loop exit
PB: predicated region body
PF: predicated region fallthrough
CT: control target
= control target key end

     0   :  { %10 = vsyncpa [#allocation4], 0  ;;  %s570_s0 = inlined_call_operand.hbm [shape: f32[2,8,32], index: 0, kind: input, shape index: {}]   ;;  %s571_s1 = inlined_call_operand.hbm [shape: bf16[32,128], index: 1, kind: input, shape index: {}]   ;;  %s572_s2 = inlined_call_operand.vmem [shape: f32[1,128], index: 2, kind: input, shape index: {}]   ;;  %s573_s3 = inlined_call_operand.hbm [shape: bf16[128,128], index: 3, kind: input, shape index: {}]   ;;  %s574_s4 = inlined_call_operand.vmem [shape: f32[1,128], index: 4, kind: input, shape index: {}]   ;;  %s575_s5 = inlined_call_operand.hbm [shape: f32[2,128], index: 5, kind: output, shape index: {}]  }
   0x1   :  { %11 = vsyncpa [#allocation7], 0 }
   0x2   :  { %12 = vsyncpa [#allocation5], 0  ;;  %s470_s18 = smov [#allocation6]   ;;  %s376_s22 = scalar_lea.hbm %s571_s1, 256 }
   0x3   :  { %s30_s19 = sshll.u32 %s470_s18, 4  ;;  %p377_p0 = scmp.ne.s32.totalorder %s571_s1, %s376_s22  ;;  %s31_s19 = int_to_ptr.vmem [resolvable:$true] %s30_s19 }
   0x4   :  { %p380_p1 = scmp.lt.u32.totalorder %s376_s22, %s571_s1 }
   0x6   :  { %p382_p2 = pnand %p380_p1, %p377_p0 }
   0x8   :  { %385 = shalt.err (!%p382_p2)
}
   0x9   :  { %s386_s27 = scalar_lea.vmem %s31_s19, 256  ;;  %p391_p4 = scmp.lt.s32.totalorder %s31_s19, %s31_s19 }
   0xa   :  { %p387_p3 = scmp.ne.s32.totalorder %s31_s19, %s386_s27  ;;  %p392_p5 = scmp.lt.s32.totalorder %s386_s27, %s386_s27 }
   0xc   :  { %p393_p6 = por %p392_p5, %p391_p4 }
   0xe   :  { %p394_p7 = pnand %p393_p6, %p387_p3 }
  0x10   :  { %397 = shalt.err (!%p394_p7)
}
  0x11   :  { %s471_s28 = smov 64   ;;  %s472_s29 = smov 4  }
  0x12   :  { %36 = dma.hbm_to_vmem [thread:$0]  %s571_s1, 256, %s31_s19, [#allocation7], %s471_s28, %s471_s28, %s472_s29  }
  0x13   :  { %s473_s7 = smov [#allocation3]   ;;  %s398_s11 = scalar_lea.hbm %s570_s0, 256 }
  0x14   :  { %s18_s8 = sshll.u32 %s473_s7, 4  ;;  %p399_p8 = scmp.ne.s32.totalorder %s570_s0, %s398_s11  ;;  %s19_s8 = int_to_ptr.vmem [resolvable:$true] %s18_s8 }
  0x15   :  { %p402_p9 = scmp.lt.u32.totalorder %s398_s11, %s570_s0 }
  0x17   :  { %p404_p10 = pnand %p402_p9, %p399_p8 }
  0x19   :  { %407 = shalt.err (!%p404_p10)
}
  0x1a   :  { %s408_s16 = scalar_lea.vmem %s19_s8, 256  ;;  %p413_p12 = scmp.lt.s32.totalorder %s19_s8, %s19_s8 }
  0x1b   :  { %p409_p11 = scmp.ne.s32.totalorder %s19_s8, %s408_s16  ;;  %p414_p13 = scmp.lt.s32.totalorder %s408_s16, %s408_s16 }
  0x1d   :  { %p415_p0 = por %p414_p13, %p413_p12 }
  0x1f   :  { %p416_p1 = pnand %p415_p0, %p409_p11 }
  0x21   :  { %419 = shalt.err (!%p416_p1)
}
  0x22   :  { %s474_s1 = smov 128   ;;  %s475_s17 = smov 8  }
  0x23   :  { %24 = dma.hbm_to_vmem [thread:$0]  %s570_s0, 256, %s19_s8, [#allocation4], %s474_s1, %s474_s1, %s475_s17  }
  0x24   :  { %s476_s20 = smov [#allocation8]   ;;  %s420_s24 = scalar_lea.hbm %s573_s3, 1024 }
  0x25   :  { %s44_s21 = sshll.u32 %s476_s20, 4  ;;  %p421_p2 = scmp.ne.s32.totalorder %s573_s3, %s420_s24  ;;  %s45_s21 = int_to_ptr.vmem [resolvable:$true] %s44_s21 }
  0x26   :  { %p424_p3 = scmp.lt.u32.totalorder %s420_s24, %s573_s3 }
  0x28   :  { %p426_p4 = pnand %p424_p3, %p421_p2 }
  0x2a   :  { %429 = shalt.err (!%p426_p4)
}
  0x2b   :  { %s430_s6 = scalar_lea.vmem %s45_s21, 1024  ;;  %p435_p6 = scmp.lt.s32.totalorder %s45_s21, %s45_s21 }
  0x2c   :  { %p431_p5 = scmp.ne.s32.totalorder %s45_s21, %s430_s6  ;;  %p436_p7 = scmp.lt.s32.totalorder %s430_s6, %s430_s6 }
  0x2e   :  { %p437_p8 = por %p436_p7, %p435_p6 }
  0x30   :  { %p438_p9 = pnand %p437_p8, %p431_p5 }
  0x32   :  { %441 = shalt.err (!%p438_p9)
}
  0x33   :  { %50 = dma.hbm_to_vmem [thread:$0]  %s573_s3, 1024, %s45_s21, [#allocation7], %s471_s28, %s471_s28, %s472_s29  }
  0x34   :  { %464 = dma.done.wait [#allocation4], 256  }
  0x35   :  { %465 = vsyncadd [#allocation4], 4294967040 }
  0x36   :  { %466 = dma.done.wait [#allocation7], 1280  }
  0x37   :  { %467 = vsyncadd [#allocation7], 4294966016  ;;  %v477_v0 = vmov 0.0   ;;  %vm478_vm0 = vmmov 0   ;;  %v366_v1 = vld [vmem:[#allocation6] sm:$0xff]   ;;  %v367_v2 = vld [vmem:[#allocation6 + $0x8] sm:$0xff]  }
  0x38   :  { %328 = vmatprep.subr.bf16.mxu0 %v477_v0  ;;  %67 = vst [vmem:[#allocation2] sm:$0x3] %v477_v0  ;;  %332 = vmatprep.mubr.msk.bf16.mxu0 %vm478_vm0, %v477_v0  ;;  %v68_v3 = vld [vmem:[#allocation3] sm:$0xff]  ;;  %v69_v4 = vld [vmem:[#allocation3 + $0x8] sm:$0xff]  ;;  %vm100_vm1 = vcmask 261120   ;;  %v370_v8 = vld [vmem:[#allocation8 + $0x10] sm:$0xff]  }
  0x39   :  { %336 = vmatprep.subr.bf16.mxu1 %v477_v0  ;;  %352 = vmatprep.mubr.msk.bf16.mxu1 %vm478_vm0, %v477_v0  ;;  %v315_v5 = vpack.c.bf16 %v69_v4, %v68_v3  ;;  %v368_v6 = vld [vmem:[#allocation8] sm:$0xff]   ;;  %v369_v7 = vld [vmem:[#allocation8 + $0x8] sm:$0xff]   ;;  %v371_v9 = vld [vmem:[#allocation8 + $0x18] sm:$0xff]   ;;  %vm162_vm2 = vcmask 1041409   ;;  %s479_s8 = smov [#allocation9]  }
  0x3a   :  { %329 = vmatpush3.bf16.msra.mxu0 %v366_v1  ;;  %337 = vmatpush3.bf16.msra.mxu1 %v368_v6  ;;  %v372_v10 = vld [vmem:[#allocation8 + $0x20] sm:$0xff]   ;;  %v373_v11 = vld [vmem:[#allocation8 + $0x28] sm:$0xff]   ;;  %v374_v12 = vld [vmem:[#allocation8 + $0x30] sm:$0xff]   ;;  %s291_s9 = sshll.u32 %s479_s8, 4  ;;  %s292_s9 = int_to_ptr.vmem [resolvable:$true] %s291_s9 }
  0x3b   :  { %330 = vmatprep.subr.bf16.mxu0 %v477_v0  ;;  %338 = vmatprep.subr.bf16.mxu1 %v477_v0  ;;  %v375_v13 = vld [vmem:[#allocation8 + $0x38] sm:$0xff]   ;;  %s442_s10 = scalar_lea.vmem %s292_s9, 32  ;;  %p447_p11 = scmp.lt.s32.totalorder %s292_s9, %s292_s9 }
  0x3c   :  { %v301_v14 = vld [vmem:[%s572_s2] ss:$0 sm:$0xff]  ;;  %p443_p10 = scmp.ne.s32.totalorder %s292_s9, %s442_s10  ;;  %p448_p12 = scmp.lt.s32.totalorder %s442_s10, %s442_s10 }
  0x3d   :  { %v306_v41 = vld [vmem:[%s574_s4] ss:$0 sm:$0xff] }
  0x3e   :  { %331 = vmatpush3.bf16.msra.mxu0 %v367_v2  ;;  %339 = vmatpush3.bf16.msra.mxu1 %v369_v7  ;;  %p449_p13 = por %p448_p12, %p447_p11 }
  0x3f   :  { %340 = vmatprep.subr.bf16.mxu1 %v477_v0  ;;  %v147_v34 = vld [vmem:[#allocation2] sm:$0x3] }
  0x40   :  { %p450_p0 = pnand %p449_p13, %p443_p10 }
  0x41   :  { %333 = vmatmul.mubr.msk.bf16.vlgmr.msra.gmra.mrb[0].mxu0 %vm100_vm1, %v315_v5 }
  0x42   :  { %341 = vmatpush3.bf16.msra.mxu1 %v370_v8 }
  0x43   :  { %342 = vmatprep.subr.bf16.mxu1 %v477_v0 }
  0x46   :  { %343 = vmatpush3.bf16.msra.mxu1 %v371_v9 }
  0x47   :  { %344 = vmatprep.subr.bf16.mxu1 %v477_v0 }
  0x4a   :  { %345 = vmatpush3.bf16.msra.mxu1 %v372_v10 }
  0x4b   :  { %346 = vmatprep.subr.bf16.mxu1 %v477_v0 }
  0x4e   :  { %347 = vmatpush3.bf16.msra.mxu1 %v373_v11 }
  0x4f   :  { %348 = vmatprep.subr.bf16.mxu1 %v477_v0 }
  0x52   :  { %349 = vmatpush3.bf16.msra.mxu1 %v374_v12 }
  0x53   :  { %350 = vmatprep.subr.bf16.mxu1 %v477_v0 }
  0x56   :  { %351 = vmatpush3.bf16.msra.mxu1 %v375_v13 }
 0x114   :  { %v138_v15 = vpop.f32.mrb[0].mxu0 }
 0x115   :  { %v139_v16 = vadd.f32 %v301_v14, %v138_v15  ;;  %v334_v17 = vpop.f32.mrb[1].mxu0 }
 0x116   :  { %v141_v18 = vpop.f32.mrb[2].mxu0 }
 0x117   :  { %v145_v19 = vmax.f32 %v139_v16, 0.0  ;;  %v142_v20 = vadd.f32 %v301_v14, %v141_v18  ;;  %v335_v21 = vpop.f32.mrb[3].mxu0 }
 0x119   :  { %v148_v22 = vrot.slane %v145_v19, 4  ;;  %v146_v23 = vmax.f32 %v142_v20, 0.0 }
 0x11b   :  { %v149_v24 = vadd.f32 %v148_v22, %v145_v19  ;;  %v154_v25 = vrot.slane %v146_v23, 4 }
 0x11d   :  { %v150_v26 = vrot.slane %v149_v24, 2  ;;  %v155_v27 = vadd.f32 %v154_v25, %v146_v23 }
 0x11f   :  { %v151_v28 = vadd.f32 %v150_v26, %v149_v24  ;;  %v156_v29 = vrot.slane %v155_v27, 2 }
 0x121   :  { %v152_v30 = vrot.slane %v151_v28, 1  ;;  %v157_v31 = vadd.f32 %v156_v29, %v155_v27 }
 0x123   :  { %v158_v32 = vrot.slane %v157_v31, 1  ;;  %v153_v33 = vadd.f32 %v152_v30, %v151_v28 }
 0x125   :  { %v159_v35 = vadd.f32 %v158_v32, %v157_v31 }
 0x127   :  { %v163_v36 = vsel %vm162_vm2, %v159_v35, %v153_v33 }
 0x128   :  { %v165_v37 = vadd.f32 %v163_v36, %v147_v34 }
 0x12a   :  { %166 = vst [vmem:[#allocation2] sm:$0x3] %v165_v37 }
 0x131   :  { %v170_v38 = vld [vmem:[#allocation2] sm:$0x3] }
 0x132   :  { %v171_v39 = vmul.f32 0.125, %v170_v38 }
 0x134   :  { %v172_v40 = vpack.c.bf16 %v171_v39, %v171_v39 }
 0x136   :  { %353 = vmatmul.mubr.bf16.vlgmr.msra.gmra.mrb[0].mxu1 %v172_v40 }
 0x209   :  { %v278_v42 = vpop.f32.mrb[0].mxu1 }
 0x20a   :  { %v279_v43 = vadd.f32 %v306_v41, %v278_v42  ;;  %v354_v44 = vpop.f32.mrb[1].mxu1 }
 0x20b   :  { %v281_v45 = vpop.f32.mrb[2].mxu1 }
 0x20c   :  { %284 = vst [vmem:[#allocation9] sm:$0x3] %v279_v43  ;;  %v355_v46 = vpop.f32.mrb[3].mxu1 }
 0x20d   :  { %453 = shalt.err (!%p450_p0)
}
 0x20e   :  { %s454_s4 = scalar_lea.hbm %s575_s5, 32 }
 0x20f   :  { %p455_p1 = scmp.ne.s32.totalorder %s575_s5, %s454_s4  ;;  %p458_p2 = scmp.lt.u32.totalorder %s454_s4, %s575_s5 }
 0x211   :  { %p460_p3 = pnand %p458_p2, %p455_p1 }
 0x213   :  { %463 = shalt.err (!%p460_p3)
}
 0x214   :  { %294 = dma.vmem_to_hbm [thread:$0]  %s292_s9, 32, %s575_s5, [#allocation5]  }
 0x215   :  { %468 = dma.done.wait [#allocation5], 32  }
 0x216   :  { %469 = vsyncadd [#allocation5], 4294967264 }
 0x217   :  { %298 = vsyncpa [#allocation4], 1 }
 0x218   :  { %299 = vsyncpa [#allocation7], 1 }
 0x219   :  { %300 = vsyncpa [#allocation5], 1 }

</bundles_post_ra>
